<compile_context>
chip_gen: v7x
topology: tpu7x:2x2x1
jax: 0.10.0
libtpu: 0.0.40
codegen_flags: <defaults>
</compile_context>

<pallas_src>
from functools import partial

import jax
import jax.numpy as jnp
from jax.experimental import pallas as pl
from jax.experimental.pallas import tpu as pltpu


def se_kernel(x_ref, w1_ref, w2_ref, o_ref, *, inv_hw):
    # x_ref : [Bblk, C, HW]   (block covers full C and HW)
    # w1_ref: [C, C//r]       (first Linear weight, transposed vs. torch)
    # w2_ref: [C//r, C]       (second Linear weight, transposed vs. torch)

    # Pass 1 (streaming read): global average pool over the spatial (lane) axis.
    pooled = jnp.sum(x_ref[...], axis=-1, dtype=jnp.float32) * inv_hw    # (Bblk, C)

    # Excitation: Linear -> ReLU -> Linear -> Sigmoid, in f32. Tiny work, fully
    # hidden under the tile DMA; intentionally NOT padded up "for the MXU".
    h = jnp.maximum(
        jnp.dot(pooled, w1_ref[...], preferred_element_type=jnp.float32), 0.0)
    gate = jax.nn.sigmoid(
        jnp.dot(h, w2_ref[...], preferred_element_type=jnp.float32))     # (Bblk, C)

    # Pass 2 (streaming read + write): per-channel gate in x's native dtype.
    # Re-reading x_ref (two clean VMEM sweeps) instead of reusing one giant
    # Python-bound value avoids spills and lets Mosaic pipeline each pass.
    o_ref[...] = x_ref[...] * gate.astype(o_ref.dtype)[:, :, None]


def _tpu_budgets():
    """Return (vmem_limit_bytes, tile_budget_bytes, tensorcores_per_chip)."""
    vmem_cap = 128 * 1024 * 1024
    n_cores = 1
    try:
        info = pltpu.get_tpu_info()
        vmem_cap = int(getattr(info, "vmem_capacity_bytes", vmem_cap))
        for name in ("num_cores", "tensorcore_count", "num_tensorcores"):
            v = getattr(info, name, None)
            if v:
                n_cores = int(v)
                break
    except Exception:
        pass
    if vmem_cap >= 100 * 1024 * 1024:
        # v5e / v6e class parts: 128 MiB VMEM -> bigger tiles, higher limit.
        return 96 * 1024 * 1024, 20 * 1024 * 1024, n_cores
    # v7x class: 64 MiB VMEM per TensorCore -> stay conservative.
    return min(48 * 1024 * 1024, (vmem_cap * 3) // 4), 10 * 1024 * 1024, n_cores


def se_block(x, w1, w2, *, max_bblk=None):
    """SEBlock forward. x: [B,C,H,W]; w1: [C//r, C], w2: [C, C//r] (torch layout)."""
    B, C, H, W = x.shape
    HW = H * W
    hidden = w1.shape[0]
    itemsize = jnp.dtype(x.dtype).itemsize

    vmem_limit, tile_budget, n_cores = _tpu_budgets()

    # VMEM accounting uses the 128-rounded lane width / 8-rounded sublane count
    # even though the HBM array is left unpadded.
    hw_vmem = ((HW + 127) // 128) * 128
    c_vmem = ((C + 7) // 8) * 8
    c_lane = ((C + 127) // 128) * 128
    h_lane = ((hidden + 127) // 128) * 128
    h_sub = ((hidden + 7) // 8) * 8
    per_b_bytes = c_vmem * hw_vmem * itemsize
    weight_bytes = 2 * 4 * (c_vmem * h_lane + h_sub * c_lane)  # double-buffered f32

    if 4 * per_b_bytes + weight_bytes > vmem_limit:
        # TODO(synk): for very large C*HW, split the spatial axis with an inner
        # pltpu.emit_pipeline (accumulate pooled sums, second sweep applies the
        # gate) instead of failing; not needed for SE-typical shapes.
        raise ValueError(
            f"SEBlock single-batch tile ({per_b_bytes} bytes, double-buffered "
            f"in+out) exceeds the VMEM budget ({vmem_limit} bytes); spatial "
            f"tiling would be required.")

    # Biggest batch block that keeps the (double-buffered) tiles inside budget.
    bblk = max(1, min(tile_budget // per_b_bytes, 128, B))
    if max_bblk is not None:
        bblk = max(1, min(bblk, max_bblk))
    # Only multi-TensorCore parts (v7x megacore) benefit from >=2 grid steps;
    # on 1-TC chips (v5e/v6e) halving just doubles per-step overhead.
    if n_cores >= 2 and B >= 2:
        bblk = max(1, min(bblk, (B + 1) // 2))

    # Partial last block is fine: batch rows are independent, OOB input rows
    # only pollute their own (dropped) outputs, OOB output rows are masked.
    grid = (pl.cdiv(B, bblk),)

    x3 = x.reshape(B, C, HW)          # no lane / batch padding, no output slice
    w1_t = w1.T                       # [C, hidden]
    w2_t = w2.T                       # [hidden, C]

    # Bandwidth-bound: read x once + write out once (+ tiny weights).
    cost = pl.CostEstimate(
        flops=int(2 * B * C * HW + 4 * B * C * hidden),
        transcendentals=int(B * C),
        bytes_accessed=int(2 * B * C * HW * itemsize
                           + (w1.size + w2.size) * jnp.dtype(w1.dtype).itemsize),
    )

    out3 = pl.pallas_call(
        partial(se_kernel, inv_hw=1.0 / HW),
        out_shape=jax.ShapeDtypeStruct((B, C, HW), x.dtype),
        grid_spec=pltpu.PrefetchScalarGridSpec(
            num_scalar_prefetch=0,
            grid=grid,
            in_specs=[
                # Last two block dims equal the full array dims -> legal even
                # when HW (e.g. 49) is not a multiple of 128.
                pl.BlockSpec((bblk, C, HW), lambda b: (b, 0, 0)),
                pl.BlockSpec((C, hidden), lambda b: (0, 0)),
                pl.BlockSpec((hidden, C), lambda b: (0, 0)),
            ],
            out_specs=pl.BlockSpec((bblk, C, HW), lambda b: (b, 0, 0)),
        ),
        compiler_params=pltpu.CompilerParams(
            dimension_semantics=("parallel",),
            vmem_limit_bytes=vmem_limit,
        ),
        cost_estimate=cost,
    )(x3, w1_t, w2_t)

    return out3.reshape(B, C, H, W)


def se_block_ref(x, w1, w2):
    """Pure-JAX reference matching the PyTorch forward (bias-free Linears)."""
    y = jnp.mean(x.astype(jnp.float32), axis=(2, 3))          # (B, C)
    y = jnp.maximum(y @ w1.T, 0.0)                            # (B, C//r)
    y = jax.nn.sigmoid(y @ w2.T)                              # (B, C)
    return (x.astype(jnp.float32) * y[:, :, None, None]).astype(x.dtype)


if __name__ == "__main__":
    key = jax.random.PRNGKey(0)
    k_x, k_w1, k_w2 = jax.random.split(key, 3)

    # SE-typical small shapes: 7x7 spatial exercises the unpadded (masked-store)
    # lane path; B=4 gives full batch blocks.
    B, C, H, W = 4, 64, 7, 7
    r = 16
    hidden = C // r

    x = jax.random.normal(k_x, (B, C, H, W), dtype=jnp.float32)
    # PyTorch Linear weight shapes: [out, in], bias=False per the module spec.
    w1 = jax.random.normal(k_w1, (hidden, C), dtype=jnp.float32) * (1.0 / C) ** 0.5
    w2 = jax.random.normal(k_w2, (C, hidden), dtype=jnp.float32) * (1.0 / hidden) ** 0.5

    out = jax.block_until_ready(se_block(x, w1, w2))
    ref = se_block_ref(x, w1, w2)
    assert out.shape == (B, C, H, W)
    assert jnp.allclose(out, ref, atol=2e-5, rtol=2e-5), "mismatch vs reference"

    # Exercise the partial-final-block path (B % bblk != 0, no batch padding).
    B2 = 5
    x2 = jax.random.normal(k_x, (B2, C, H, W), dtype=jnp.float32)
    out2 = jax.block_until_ready(se_block(x2, w1, w2, max_bblk=2))
    ref2 = se_block_ref(x2, w1, w2)
    assert out2.shape == (B2, C, H, W)
    assert jnp.allclose(out2, ref2, atol=2e-5, rtol=2e-5), "mismatch (partial block)"

    print("KERNEL_OK")
</pallas_src>

<mosaic_0001>
module attributes {stable_mosaic.version = 11 : i64} {
  func.func @se_kernel(%arg0: i32, %arg1: memref<4x64x49xf32, #tpu.memory_space<vmem>>, %arg2: memref<64x4xf32, #tpu.memory_space<vmem>>, %arg3: memref<4x64xf32, #tpu.memory_space<vmem>>, %arg4: memref<4x64x49xf32, #tpu.memory_space<vmem>>) attributes {dimension_semantics = [#tpu.dimension_semantics<parallel>], iteration_bounds = array<i64: 1>, scalar_prefetch = 0 : i64, scratch_operands = 0 : i64, tpu.core_type = #tpu.core_type<tc>, window_params = [{transform_indices = @transform_0, window_bounds = array<i64: 4, 64, 49>}, {pipeline_mode = #tpu.pipeline_mode<synchronous>, transform_indices = @transform_1, window_bounds = array<i64: 64, 4>}, {pipeline_mode = #tpu.pipeline_mode<synchronous>, transform_indices = @transform_2, window_bounds = array<i64: 4, 64>}, {transform_indices = @transform_3, window_bounds = array<i64: 4, 64, 49>}]} {
    %c0 = arith.constant 0 : index
    %c0_0 = arith.constant 0 : index
    %c0_1 = arith.constant 0 : index
    %0 = vector.load %arg1[%c0, %c0_0, %c0_1] : memref<4x64x49xf32, #tpu.memory_space<vmem>>, vector<4x64x49xf32>
    %cst = arith.constant dense<0.000000e+00> : vector<4x64xf32>
    %1 = vector.multi_reduction <add>, %0, %cst [2] : vector<4x64x49xf32> to vector<4x64xf32>
    %cst_2 = arith.constant 0.0204081628 : f32
    %2 = vector.broadcast %cst_2 : f32 to vector<4x64xf32>
    %3 = arith.mulf %1, %2 : vector<4x64xf32>
    %c0_3 = arith.constant 0 : index
    %c0_4 = arith.constant 0 : index
    %4 = vector.load %arg2[%c0_3, %c0_4] : memref<64x4xf32, #tpu.memory_space<vmem>>, vector<64x4xf32>
    %cst_5 = arith.constant dense<0.000000e+00> : vector<4x4xf32>
    %5 = tpu.matmul %3, %4, %cst_5 {dimension_numbers = #tpu.dot_dimension_numbers<[1], [0], [0], [1], [0, 0, 1, 1], [], []>} : vector<4x64xf32>, vector<64x4xf32>, vector<4x4xf32> -> vector<4x4xf32>
    %cst_6 = arith.constant 0.000000e+00 : f32
    %6 = vector.broadcast %cst_6 : f32 to vector<4x4xf32>
    %7 = arith.maximumf %5, %6 : vector<4x4xf32>
    %c0_7 = arith.constant 0 : index
    %c0_8 = arith.constant 0 : index
    %8 = vector.load %arg3[%c0_7, %c0_8] : memref<4x64xf32, #tpu.memory_space<vmem>>, vector<4x64xf32>
    %cst_9 = arith.constant dense<0.000000e+00> : vector<4x64xf32>
    %9 = tpu.matmul %7, %8, %cst_9 {dimension_numbers = #tpu.dot_dimension_numbers<[1], [0], [0], [1], [0, 0, 1, 1], [], []>} : vector<4x4xf32>, vector<4x64xf32>, vector<4x64xf32> -> vector<4x64xf32>
    %10 = arith.negf %9 : vector<4x64xf32>
    %11 = math.exp %10 : vector<4x64xf32>
    %cst_10 = arith.constant 1.000000e+00 : f32
    %12 = vector.broadcast %cst_10 : f32 to vector<4x64xf32>
    %13 = arith.addf %12, %11 : vector<4x64xf32>
    %14 = arith.divf %12, %13 : vector<4x64xf32>
    %c0_11 = arith.constant 0 : index
    %c0_12 = arith.constant 0 : index
    %c0_13 = arith.constant 0 : index
    %15 = vector.load %arg1[%c0_11, %c0_12, %c0_13] : memref<4x64x49xf32, #tpu.memory_space<vmem>>, vector<4x64x49xf32>
    %16 = vector.shape_cast %14 : vector<4x64xf32> to vector<4x64x1xf32>
    %17 = vector.broadcast %16 : vector<4x64x1xf32> to vector<4x64x49xf32>
    %18 = arith.mulf %15, %17 : vector<4x64x49xf32>
    %c0_14 = arith.constant 0 : index
    %c0_15 = arith.constant 0 : index
    %c0_16 = arith.constant 0 : index
    %19 = vector.load %arg4[%c0_14, %c0_15, %c0_16] : memref<4x64x49xf32, #tpu.memory_space<vmem>>, vector<4x64x49xf32>
    tpu.vector_store %arg4[%c0_14, %c0_15, %c0_16], %18 {strides = array<i32>} : memref<4x64x49xf32, #tpu.memory_space<vmem>>, vector<4x64x49xf32>,
    return
  }
  func.func @transform_0(%arg0: i32) -> (i32, i32, i32) {
    %c0_i32 = arith.constant 0 : i32
    %c0_i32_0 = arith.constant 0 : i32
    %c0_i32_1 = arith.constant 0 : i32
    return %arg0, %c0_i32, %c0_i32_0 : i32, i32, i32
  }
  func.func @transform_1(%arg0: i32) -> (i32, i32) {
    %c0_i32 = arith.constant 0 : i32
    %c0_i32_0 = arith.constant 0 : i32
    %c0_i32_1 = arith.constant 0 : i32
    return %c0_i32, %c0_i32_0 : i32, i32
  }
  func.func @transform_2(%arg0: i32) -> (i32, i32) {
    %c0_i32 = arith.constant 0 : i32
    %c0_i32_0 = arith.constant 0 : i32
    %c0_i32_1 = arith.constant 0 : i32
    return %c0_i32, %c0_i32_0 : i32, i32
  }
  func.func @transform_3(%arg0: i32) -> (i32, i32, i32) {
    %c0_i32 = arith.constant 0 : i32
    %c0_i32_0 = arith.constant 0 : i32
    %c0_i32_1 = arith.constant 0 : i32
    return %arg0, %c0_i32, %c0_i32_0 : i32, i32, i32
  }
}

</mosaic_0001>

<bundles_post_ra>
// kernel: tpu_custom_call.1
= control target key start
LH: loop header
LB: loop body
LE: loop exit
PB: predicated region body
PF: predicated region fallthrough
CT: control target
= control target key end

     0   :  { %8 = vsyncpa [#allocation3], 0  ;;  %s1364_s0 = inlined_call_operand.hbm [shape: f32[4,64,49], index: 0, kind: input, shape index: {}]   ;;  %s1365_s1 = inlined_call_operand.hbm [shape: f32[64,4], index: 1, kind: input, shape index: {}]   ;;  %s1366_s2 = inlined_call_operand.hbm [shape: f32[4,64], index: 2, kind: input, shape index: {}]   ;;  %s1367_s3 = inlined_call_operand.hbm [shape: f32[4,64,49], index: 3, kind: output, shape index: {}]  }
   0x1   :  { %9 = vsyncpa [#allocation6], 0 }
   0x2   :  { %10 = vsyncpa [#allocation4], 0  ;;  %s972_s12 = smov [#allocation5]   ;;  %s973_s14 = smov [#allocation2]  }
   0x3   :  { %s28_s13 = sshll.u32 %s972_s12, 4  ;;  %s16_s15 = sshll.u32 %s973_s14, 4  ;;  %s29_s13 = int_to_ptr.vmem [resolvable:$true] %s28_s13  ;;  %s1001_s15 = int_to_ptr.vmem [resolvable:$true] %s16_s15 }
   0x4   :  { %s878_s18 = scalar_lea.hbm %s1365_s1, 1024 }
   0x5   :  { %p879_p0 = scmp.ne.s32.totalorder %s1365_s1, %s878_s18  ;;  %p882_p1 = scmp.lt.u32.totalorder %s878_s18, %s1365_s1 }
   0x7   :  { %p884_p2 = pnand %p882_p1, %p879_p0 }
   0x9   :  { %887 = shalt.err (!%p884_p2)
}
   0xa   :  { %s888_s23 = scalar_lea.vmem %s29_s13, 1024  ;;  %p893_p4 = scmp.lt.s32.totalorder %s29_s13, %s29_s13 }
   0xb   :  { %p889_p3 = scmp.ne.s32.totalorder %s29_s13, %s888_s23  ;;  %p894_p5 = scmp.lt.s32.totalorder %s888_s23, %s888_s23 }
   0xd   :  { %p895_p6 = por %p894_p5, %p893_p4 }
   0xf   :  { %p896_p7 = pnand %p895_p6, %p889_p3 }
  0x11   :  { %899 = shalt.err (!%p896_p7)
}
  0x12   :  { %s974_s24 = smov 128   ;;  %s975_s25 = smov 8  }
  0x13   :  { %34 = dma.hbm_to_vmem [thread:$0]  %s1365_s1, 1024, %s29_s13, [#allocation6], %s974_s24, %s974_s24, %s975_s25  }
  0x14   :  { %s900_s30 = scalar_lea.hbm %s1364_s0, 4096 }
  0x15   :  { %p901_p8 = scmp.ne.s32.totalorder %s1364_s0, %s900_s30  ;;  %p904_p9 = scmp.lt.u32.totalorder %s900_s30, %s1364_s0 }
  0x17   :  { %p906_p10 = pnand %p904_p9, %p901_p8 }
  0x19   :  { %909 = shalt.err (!%p906_p10)
}
  0x1a   :  { %s910_s8 = scalar_lea.vmem %s1001_s15, 4096  ;;  %p915_p12 = scmp.lt.s32.totalorder %s1001_s15, %s1001_s15 }
  0x1b   :  { %p911_p11 = scmp.ne.s32.totalorder %s1001_s15, %s910_s8  ;;  %p916_p13 = scmp.lt.s32.totalorder %s910_s8, %s910_s8 }
  0x1d   :  { %p917_p0 = por %p916_p13, %p915_p12 }
  0x1f   :  { %p918_p1 = pnand %p917_p0, %p911_p11 }
  0x21   :  { %921 = shalt.err (!%p918_p1)
}
  0x22   :  { %22 = dma.hbm_to_vmem [thread:$0]  %s1364_s0, 4096, %s1001_s15, [#allocation3], %s974_s24, %s974_s24, %s975_s25  }
  0x23   :  { %s976_s10 = smov [#allocation7]   ;;  %s922_s14 = scalar_lea.hbm %s1366_s2, 64 }
  0x24   :  { %s41_s11 = sshll.u32 %s976_s10, 4  ;;  %p923_p2 = scmp.ne.s32.totalorder %s1366_s2, %s922_s14  ;;  %s42_s11 = int_to_ptr.vmem [resolvable:$true] %s41_s11 }
  0x25   :  { %p926_p3 = scmp.lt.u32.totalorder %s922_s14, %s1366_s2 }
  0x27   :  { %p928_p4 = pnand %p926_p3, %p923_p2 }
  0x29   :  { %931 = shalt.err (!%p928_p4)
}
  0x2a   :  { %s932_s20 = scalar_lea.vmem %s42_s11, 64  ;;  %p937_p6 = scmp.lt.s32.totalorder %s42_s11, %s42_s11 }
  0x2b   :  { %p933_p5 = scmp.ne.s32.totalorder %s42_s11, %s932_s20  ;;  %p938_p7 = scmp.lt.s32.totalorder %s932_s20, %s932_s20 }
  0x2d   :  { %p939_p8 = por %p938_p7, %p937_p6 }
  0x2f   :  { %p940_p9 = pnand %p939_p8, %p933_p5 }
  0x31   :  { %943 = shalt.err (!%p940_p9)
}
  0x32   :  { %44 = dma.hbm_to_vmem [thread:$0]  %s1366_s2, 64, %s42_s11, [#allocation6]  }
  0x33   :  { %966 = dma.done.wait [#allocation3], 4096  }
  0x34   :  { %967 = vsyncadd [#allocation3], 4294963200 }
  0x35   :  { %968 = dma.done.wait [#allocation6], 1088  }
  0x36   :  { %969 = vsyncadd [#allocation6], 4294966208  ;;  %vm86_vm0 = vcmask 400384   ;;  %v1050_v0 = vld [vmem:[#allocation2 + $0x40] sm:$0xff]  ;;  %v1054_v2 = vld [vmem:[#allocation2 + $0x48] sm:$0xff]  ;;  %vm978_vm1 = vmmov 0  }
  0x37   :  { %v1052_v1 = vld [vmem:[#allocation2] sm:$0xff]  ;;  %v111_v3 = vsel %vm86_vm0, %v1050_v0, 0.0  ;;  %v1060_v5 = vld [vmem:[#allocation2 + $0x8] sm:$0xff]  ;;  %v114_v6 = vsel %vm86_vm0, %v1054_v2, 0.0  ;;  %v1066_v8 = vld [vmem:[#allocation2 + $0x50] sm:$0xff]  ;;  %vm266_vm2 = vcmask 130112  }
  0x38   :  { %v87_v4 = vsel %vm86_vm0, %v1052_v1, 0.0  ;;  %112 = vadd.xlane.f32.xlu1 %v111_v3  ;;  %v90_v7 = vsel %vm86_vm0, %v1060_v5, 0.0  ;;  %v1068_v9 = vld [vmem:[#allocation2 + $0x10] sm:$0xff]  ;;  %v117_v10 = vsel %vm86_vm0, %v1066_v8, 0.0  ;;  %v1074_v12 = vld [vmem:[#allocation2 + $0x88] sm:$0xff]  ;;  %v1076_v13 = vld [vmem:[#allocation2 + $0x80] sm:$0xff] }
  0x39   :  { %88 = vadd.xlane.f32.xlu0 %v87_v4  ;;  %v93_v11 = vsel %vm86_vm0, %v1068_v9, 0.0  ;;  %v138_v14 = vsel %vm86_vm0, %v1074_v12, 0.0  ;;  %v135_v15 = vsel %vm86_vm0, %v1076_v13, 0.0  ;;  %v1082_v16 = vld [vmem:[#allocation2 + $0x58] sm:$0xff]  ;;  %v1090_v20 = vld [vmem:[#allocation2 + $0xc0] sm:$0xff]  ;;  %v1092_v21 = vld [vmem:[#allocation2 + $0x90] sm:$0xff] }
  0x3a   :  { %v1084_v17 = vld [vmem:[#allocation2 + $0x18] sm:$0xff]  ;;  %v120_v18 = vsel %vm86_vm0, %v1082_v16, 0.0  ;;  %1381 = vst [vmem:[#allocation12_spill] sm:$0xff] %v1090_v20  ;;  %v159_v22 = vsel %vm86_vm0, %v1090_v20, 0.0  ;;  %v141_v23 = vsel %vm86_vm0, %v1092_v21, 0.0  ;;  %v1098_v24 = vld [vmem:[#allocation2 + $0x20] sm:$0xff] }
  0x3b   :  { %v96_v19 = vsel %vm86_vm0, %v1084_v17, 0.0  ;;  %v1100_v25 = vld [vmem:[#allocation2 + $0xc8] sm:$0xff]  ;;  %v99_v26 = vsel %vm86_vm0, %v1098_v24, 0.0  ;;  %v1106_v28 = vld [vmem:[#allocation2 + $0x98] sm:$0xff]  ;;  %v1108_v29 = vld [vmem:[#allocation2 + $0x60] sm:$0xff]  ;;  %vm273_vm3 = vcmask 195712  }
  0x3c   :  { %115 = vadd.xlane.f32.xlu1 %v114_v6  ;;  %1382 = vst [vmem:[#allocation13_spill] sm:$0xff] %v1100_v25  ;;  %v162_v27 = vsel %vm86_vm0, %v1100_v25, 0.0  ;;  %1383 = vst [vmem:[#allocation14_spill] sm:$0xff] %v1106_v28  ;;  %v144_v30 = vsel %vm86_vm0, %v1106_v28, 0.0  ;;  %v123_v31 = vsel %vm86_vm0, %v1108_v29, 0.0  ;;  %v1114_v32 = vld [vmem:[#allocation2 + $0x28] sm:$0xff] }
  0x3d   :  { %91 = vadd.xlane.f32.xlu0 %v90_v7  ;;  %v1116_v33 = vld [vmem:[#allocation2 + $0xd0] sm:$0xff]  ;;  %v102_v34 = vsel %vm86_vm0, %v1114_v32, 0.0  ;;  %v1122_v36 = vld [vmem:[#allocation2 + $0xa0] sm:$0xff]  ;;  %v1124_v37 = vld [vmem:[#allocation2 + $0x68] sm:$0xff]  ;;  %v977_v7 = vmov 0.0|0.0   ;;  %vm280_vm4 = vcmask 261312  }
  0x3e   :  { %1384 = vst [vmem:[#allocation15_spill] sm:$0xff] %v1116_v33  ;;  %v165_v35 = vsel %vm86_vm0, %v1116_v33, 0.0  ;;  %1385 = vst [vmem:[#allocation16_spill] sm:$0xff] %v1122_v36  ;;  %v147_v38 = vsel %vm86_vm0, %v1122_v36, 0.0  ;;  %v126_v39 = vsel %vm86_vm0, %v1124_v37, 0.0  ;;  %v1130_v40 = vld [vmem:[#allocation2 + $0x30] sm:$0xff]  ;;  %853 = vmatprep.subr.bf16.mxu0 %v977_v7 }
  0x3f   :  { %v1132_v41 = vld [vmem:[#allocation2 + $0xd8] sm:$0xff]  ;;  %v105_v42 = vsel %vm86_vm0, %v1130_v40, 0.0  ;;  %v1138_v44 = vld [vmem:[#allocation2 + $0xa8] sm:$0xff]  ;;  %v1140_v45 = vld [vmem:[#allocation2 + $0x70] sm:$0xff]  ;;  %vm287_vm5 = vcmask 326912   ;;  %vm294_vm6 = vcmask 392512  }
  0x40   :  { %118 = vadd.xlane.f32.xlu1 %v117_v10  ;;  %1386 = vst [vmem:[#allocation17_spill] sm:$0xff] %v1132_v41  ;;  %v168_v43 = vsel %vm86_vm0, %v1132_v41, 0.0  ;;  %1387 = vst [vmem:[#allocation18_spill] sm:$0xff] %v1138_v44  ;;  %v150_v46 = vsel %vm86_vm0, %v1138_v44, 0.0  ;;  %v129_v47 = vsel %vm86_vm0, %v1140_v45, 0.0  ;;  %v1146_v48 = vld [vmem:[#allocation2 + $0x38] sm:$0xff] }
  0x41   :  { %94 = vadd.xlane.f32.xlu0 %v93_v11  ;;  %v1148_v49 = vld [vmem:[#allocation2 + $0xe0] sm:$0xff]  ;;  %v108_v50 = vsel %vm86_vm0, %v1146_v48, 0.0  ;;  %v1154_v52 = vld [vmem:[#allocation2 + $0xb0] sm:$0xff]  ;;  %v1156_v53 = vld [vmem:[#allocation2 + $0x78] sm:$0xff]  ;;  %vm301_vm7 = vcmask 458112   ;;  %vm308_vm8 = vcmask 523712  }
  0x42   :  { %1388 = vst [vmem:[#allocation19_spill] sm:$0xff] %v1148_v49  ;;  %v171_v51 = vsel %vm86_vm0, %v1148_v49, 0.0  ;;  %1389 = vst [vmem:[#allocation20_spill] sm:$0xff] %v1154_v52  ;;  %v153_v54 = vsel %vm86_vm0, %v1154_v52, 0.0  ;;  %v132_v55 = vsel %vm86_vm0, %v1156_v53, 0.0  ;;  %v1162_v56 = vld [vmem:[#allocation2 + $0xb8] sm:$0xff] }
  0x43   :  { %1390 = vst [vmem:[#allocation21_spill] sm:$0xff] %v1162_v56  ;;  %v1164_v57 = vld [vmem:[#allocation2 + $0xe8] sm:$0xff]  ;;  %v156_v58 = vsel %vm86_vm0, %v1162_v56, 0.0  ;;  %v1170_v60 = vld [vmem:[#allocation2 + $0xf0] sm:$0xff]  ;;  %v1172_v61 = vld [vmem:[#allocation2 + $0xf8] sm:$0xff]  ;;  %vm427_vm9 = vcmask 1041409  }
  0x44   :  { %139 = vadd.xlane.f32.xlu1 %v138_v14  ;;  %1391 = vst [vmem:[#allocation22_spill] sm:$0xff] %v1164_v57  ;;  %v174_v59 = vsel %vm86_vm0, %v1164_v57, 0.0  ;;  %1392 = vst [vmem:[#allocation23_spill] sm:$0xff] %v1170_v60  ;;  %v177_v62 = vsel %vm86_vm0, %v1170_v60, 0.0  ;;  %v180_v63 = vsel %vm86_vm0, %v1172_v61, 0.0  ;;  %v215_v3 = vld [vmem:[#allocation5] sm:$0xff] }
  0x45   :  { %136 = vadd.xlane.f32.xlu0 %v135_v15  ;;  %1393 = vst [vmem:[#allocation24_spill] sm:$0xff] %v1172_v61  ;;  %v216_v4 = vld [vmem:[#allocation5 + $0x8] sm:$0xff]  ;;  %v217_v10 = vld [vmem:[#allocation5 + $0x10] sm:$0xff]  ;;  %v218_v11 = vld [vmem:[#allocation5 + $0x18] sm:$0xff]  ;;  %vm429_vm10 = vcmask 1042434   ;;  %vm431_vm11 = vcmask 1043459  }
  0x46   :  { %v854_v6 = vpack.c.bf16 %v216_v4, %v215_v3  ;;  %v857_v14 = vpack.c.bf16 %v218_v11, %v217_v10  ;;  %v219_v15 = vld [vmem:[#allocation5 + $0x20] sm:$0xff]  ;;  %vm433_vm12 = vcmask 523264   ;;  %vm512_vm13 = vcmask 1043456   ;;  %s980_s2 = smov [#allocation8]  }
  0x47   :  { %vm508_vm14 = vcmask 31744   ;;  %s801_s21 = sshll.u32 %s980_s2, 4  ;;  %s802_s21 = int_to_ptr.vmem [resolvable:$true] %s801_s21 }
  0x48   :  { %121 = vadd.xlane.f32.xlu1 %v120_v18  ;;  %855 = vmatpush3.bf16.msra.mxu0 %v854_v6  ;;  %v220_v18 = vld [vmem:[#allocation5 + $0x28] sm:$0xff]  ;;  %s944_s22 = scalar_lea.vmem %s802_s21, 4096  ;;  %p949_p11 = scmp.lt.s32.totalorder %s802_s21, %s802_s21 }
  0x49   :  { %97 = vadd.xlane.f32.xlu0 %v96_v19  ;;  %856 = vmatprep.subr.bf16.mxu0 %v977_v7  ;;  %v860_v19 = vpack.c.bf16 %v220_v18, %v219_v15  ;;  %p945_p10 = scmp.ne.s32.totalorder %s802_s21, %s944_s22  ;;  %p950_p12 = scmp.lt.s32.totalorder %s944_s22, %s944_s22 }
  0x4b   :  { %p951_p13 = por %p950_p12, %p949_p11 }
  0x4c   :  { %160 = vadd.xlane.f32.xlu1 %v159_v22  ;;  %858 = vmatpush3.bf16.msra.mxu0 %v857_v14  ;;  %v221_v22 = vld [vmem:[#allocation5 + $0x30] sm:$0xff] }
  0x4d   :  { %142 = vadd.xlane.f32.xlu0 %v141_v23  ;;  %859 = vmatprep.subr.bf16.mxu0 %v977_v7  ;;  %v222_v23 = vld [vmem:[#allocation5 + $0x38] sm:$0xff]  ;;  %p952_p0 = pnand %p951_p13, %p945_p10 }
  0x50   :  { %100 = vadd.xlane.f32.xlu1 %v99_v26  ;;  %861 = vmatpush3.bf16.msra.mxu0 %v860_v19  ;;  %v863_v26 = vpack.c.bf16 %v222_v23, %v221_v22 }
  0x51   :  { %163 = vadd.xlane.f32.xlu0 %v162_v27  ;;  %862 = vmatprep.subr.bf16.mxu0 %v977_v7  ;;  %v979_v27 = vmov 0.0  }
  0x52   :  { %845 = vmatprep.mubr.msk.f32.mxu0 %vm978_vm1, %v979_v27  ;;  %848 = vmatprep.subr.mxu1 %v979_v27 }
  0x53   :  { %850 = vmatprep.mubr.msk.f32.mxu1 %vm978_vm1, %v979_v27 }
  0x54   :  { %145 = vadd.xlane.f32.xlu1 %v144_v30  ;;  %864 = vmatpush3.bf16.msra.mxu0 %v863_v26 }
  0x55   :  { %124 = vadd.xlane.f32.xlu0 %v123_v31 }
  0x58   :  { %103 = vadd.xlane.f32.xlu1 %v102_v34 }
  0x59   :  { %166 = vadd.xlane.f32.xlu0 %v165_v35 }
  0x5c   :  { %148 = vadd.xlane.f32.xlu1 %v147_v38 }
  0x5d   :  { %127 = vadd.xlane.f32.xlu0 %v126_v39 }
  0x60   :  { %106 = vadd.xlane.f32.xlu1 %v105_v42 }
  0x61   :  { %169 = vadd.xlane.f32.xlu0 %v168_v43 }
  0x64   :  { %151 = vadd.xlane.f32.xlu1 %v150_v46 }
  0x65   :  { %130 = vadd.xlane.f32.xlu0 %v129_v47 }
  0x68   :  { %109 = vadd.xlane.f32.xlu1 %v108_v50 }
  0x69   :  { %172 = vadd.xlane.f32.xlu0 %v171_v51 }
  0x6c   :  { %154 = vadd.xlane.f32.xlu1 %v153_v54 }
  0x6d   :  { %133 = vadd.xlane.f32.xlu0 %v132_v55 }
  0x70   :  { %157 = vadd.xlane.f32.xlu1 %v156_v58 }
  0x71   :  { %175 = vadd.xlane.f32.xlu0 %v174_v59 }
  0x74   :  { %181 = vadd.xlane.f32.xlu1 %v180_v63 }
  0x75   :  { %178 = vadd.xlane.f32.xlu0 %v177_v62  ;;  %v255_v62 = vlaneseq }
  0x77   :  { %v256_v4 = vand.u32 127, %v255_v62  ;;  %v1182_v6 = vshrl.u32 %v255_v62, 7 }
  0x79   :  { %v261_v7 = vadd.s32 4294967288, %v256_v4  ;;  %v268_v10 = vadd.s32 4294967280, %v256_v4  ;;  %v275_v15 = vadd.s32 4294967272, %v256_v4  ;;  %v1189_v18 = vsub.s32 %v256_v4, %v1182_v6 }
  0x7a   :  { %v282_v19 = vadd.s32 4294967264, %v256_v4 }
  0x7b   :  { %v1192_v23 = vsub.s32 %v261_v7, %v1182_v6  ;;  %v1195_v61 = vsub.s32 %v268_v10, %v1182_v6  ;;  %v1200_v33 = vsub.s32 %v275_v15, %v1182_v6  ;;  %v303_v10 = vadd.s32 4294967240, %v256_v4 }
  0x7c   :  { %v1203_v20 = vsub.s32 %v282_v19, %v1182_v6 }
  0xc5   :  { %v113_v30 = vpop.xlane.xlu1 %112 }
  0xc6   :  { %v89_v31 = vpop.xlane.xlu0 %88  ;;  %v191_v22 = vmul.f32 0.020408163, %v113_v30 }
  0xc7   :  { %v183_v26 = vmul.f32 0.020408163, %v89_v31 }
  0xc8   :  { %v313_v31 = vrot.slane %v191_v22, %v1189_v18 }
  0xc9   :  { %v116_v34 = vpop.xlane.xlu1 %115  ;;  %v260_v44 = vrot.slane %v183_v26, %v1189_v18 }
  0xca   :  { %v92_v35 = vpop.xlane.xlu0 %91  ;;  %v192_v27 = vmul.f32 0.020408163, %v116_v34  ;;  %v289_v34 = vadd.s32 4294967256, %v256_v4 }
  0xcb   :  { %v184_v62 = vmul.f32 0.020408163, %v92_v35  ;;  %v296_v35 = vadd.s32 4294967248, %v256_v4 }
  0xcd   :  { %v119_v38 = vpop.xlane.xlu1 %118 }
  0xce   :  { %v95_v39 = vpop.xlane.xlu0 %94  ;;  %v193_v41 = vmul.f32 0.020408163, %v119_v38  ;;  %v317_v38 = vrot.slane %v192_v27, %v1192_v23 }
  0xcf   :  { %v185_v49 = vmul.f32 0.020408163, %v95_v39  ;;  %v265_v39 = vrot.slane %v184_v62, %v1192_v23  ;;  %v1219_v62 = vsub.s32 %v296_v35, %v1182_v6 }
  0xd1   :  { %v140_v42 = vpop.xlane.xlu1 %139 }
  0xd2   :  { %v137_v43 = vpop.xlane.xlu0 %136  ;;  %v200_v25 = vmul.f32 0.020408163, %v140_v42 }
  0xd3   :  { %v199_v30 = vmul.f32 0.020408163, %v137_v43 }
  0xd4   :  { %v356_v19 = vrot.slane %v200_v25, %v1192_v23  ;;  %v267_v25 = vsel %vm266_vm2, %v265_v39, %v260_v44 }
  0xd5   :  { %v122_v46 = vpop.xlane.xlu1 %121  ;;  %v352_v22 = vrot.slane %v199_v30, %v1189_v18 }
  0xd6   :  { %v98_v47 = vpop.xlane.xlu0 %97  ;;  %v194_v7 = vmul.f32 0.020408163, %v122_v46  ;;  %v322_v46 = vrot.slane %v193_v41, %v1195_v61  ;;  %v318_v41 = vsel %vm266_vm2, %v317_v38, %v313_v31 }
  0xd7   :  { %v186_v56 = vmul.f32 0.020408163, %v98_v47  ;;  %v272_v47 = vrot.slane %v185_v49, %v1195_v61 }
  0xd8   :  { %v327_v4 = vrot.slane %v194_v7, %v1200_v33 }
  0xd9   :  { %v161_v50 = vpop.xlane.xlu1 %160  ;;  %v279_v26 = vrot.slane %v186_v56, %v1200_v33  ;;  %v323_v56 = vsel %vm273_vm3, %v322_v46, %v318_v41 }
  0xda   :  { %v143_v51 = vpop.xlane.xlu0 %142  ;;  %v207_v27 = vmul.f32 0.020408163, %v161_v50  ;;  %v274_v50 = vsel %vm273_vm3, %v272_v47, %v267_v25  ;;  %v328_v31 = vsel %vm280_vm4, %v327_v4, %v323_v56 }
  0xdb   :  { %v201_v42 = vmul.f32 0.020408163, %v143_v51  ;;  %v1216_v51 = vsub.s32 %v289_v34, %v1182_v6  ;;  %v357_v34 = vsel %vm266_vm2, %v356_v19, %v352_v22  ;;  %v281_v44 = vsel %vm280_vm4, %v279_v26, %v274_v50 }
  0xdc   :  { %v391_v35 = vrot.slane %v207_v27, %v1189_v18 }
  0xdd   :  { %v101_v54 = vpop.xlane.xlu1 %100  ;;  %v361_v49 = vrot.slane %v201_v42, %v1195_v61 }
  0xde   :  { %v164_v55 = vpop.xlane.xlu0 %163  ;;  %v187_v52 = vmul.f32 0.020408163, %v101_v54 }
  0xdf   :  { %v208_v28 = vmul.f32 0.020408163, %v164_v55 }
  0xe0   :  { %v286_v55 = vrot.slane %v187_v52, %v1203_v20  ;;  %v362_v52 = vsel %vm273_vm3, %v361_v49, %v357_v34 }
  0xe1   :  { %v146_v58 = vpop.xlane.xlu1 %145 }
  0xe2   :  { %v125_v59 = vpop.xlane.xlu0 %124  ;;  %v202_v36 = vmul.f32 0.020408163, %v146_v58  ;;  %v1228_v58 = vsub.s32 %v303_v10, %v1182_v6 }
  0xe3   :  { %v195_v54 = vmul.f32 0.020408163, %v125_v59  ;;  %v395_v59 = vrot.slane %v208_v28, %v1192_v23  ;;  %v288_v28 = vsel %vm287_vm5, %v286_v55, %v281_v44 }
  0xe4   :  { %v366_v38 = vrot.slane %v202_v36, %v1200_v33 }
  0xe5   :  { %v1178_v63 = vpop.xlane.xlu1 %103  ;;  %v332_v10 = vrot.slane %v195_v54, %v1203_v20 }
  0xe6   :  { %v1180_v3 = vpop.xlane.xlu0 %166  ;;  %v188_v39 = vmul.f32 0.020408163, %v1178_v63  ;;  %v396_v63 = vsel %vm266_vm2, %v395_v59, %v391_v35  ;;  %v367_v27 = vsel %vm280_vm4, %v366_v38, %v362_v52 }
  0xe7   :  { %v209_v42 = vmul.f32 0.020408163, %v1180_v3 }
  0xe9   :  { %v1184_v11 = vpop.xlane.xlu1 %148 }
  0xea   :  { %v1186_v14 = vpop.xlane.xlu0 %127  ;;  %v203_v46 = vmul.f32 0.020408163, %v1184_v11  ;;  %v293_v11 = vrot.slane %v188_v39, %v1216_v51 }
  0xeb   :  { %v196_v47 = vmul.f32 0.020408163, %v1186_v14  ;;  %v400_v14 = vrot.slane %v209_v42, %v1195_v61 }
  0xec   :  { %v295_v44 = vsel %vm294_vm6, %v293_v11, %v288_v28 }
  0xed   :  { %v107_v57 = vpop.xlane.xlu1 %106 }
  0xee   :  { %v1197_v60 = vpop.xlane.xlu0 %169  ;;  %v189_v18 = vmul.f32 0.020408163, %v107_v57  ;;  %v333_v57 = vsel %vm287_vm5, %v332_v10, %v328_v31 }
  0xef   :  { %v210_v3 = vmul.f32 0.020408163, %v1197_v60 }
  0xf0   :  { %v300_v34 = vrot.slane %v189_v18, %v1219_v62 }
  0xf1   :  { %v152_v15 = vpop.xlane.xlu1 %151  ;;  %v405_v61 = vrot.slane %v210_v3, %v1200_v33 }
  0xf2   :  { %v131_v43 = vpop.xlane.xlu0 %130  ;;  %v204_v23 = vmul.f32 0.020408163, %v152_v15  ;;  %v371_v15 = vrot.slane %v203_v46, %v1203_v20 }
  0xf3   :  { %v197_v36 = vmul.f32 0.020408163, %v131_v43  ;;  %v337_v43 = vrot.slane %v196_v47, %v1216_v51 }
  0xf4   :  { %v376_v54 = vrot.slane %v204_v23, %v1216_v51  ;;  %v372_v38 = vsel %vm287_vm5, %v371_v15, %v367_v27  ;;  %v507_v15 = vld [vmem:[#allocation7] sm:$0xf] }
  0xf5   :  { %v110_v30 = vpop.xlane.xlu1 %109  ;;  %v342_v56 = vrot.slane %v197_v36, %v1219_v62  ;;  %v338_v39 = vsel %vm294_vm6, %v337_v43, %v333_v57  ;;  %849 = vmatpush3.msk.msra.mxu1 %vm512_vm13, %v507_v15  ;;  %v1395_v15 = vld [vmem:[#allocation14_spill] sm:$0xff] }
  0xf6   :  { %v173_v7 = vpop.xlane.xlu0 %172  ;;  %v190_v25 = vmul.f32 0.020408163, %v110_v30  ;;  %v401_v30 = vsel %vm273_vm3, %v400_v14, %v396_v63  ;;  %v377_v46 = vsel %vm294_vm6, %v376_v54, %v372_v38 }
  0xf7   :  { %v211_v41 = vmul.f32 0.020408163, %v173_v7  ;;  %v343_v47 = vsel %vm301_vm7, %v342_v56, %v338_v39  ;;  %v406_v28 = vsel %vm280_vm4, %v405_v61, %v401_v30  ;;  %v629_v61 = vsub.s32 1, %v1182_v6 }
  0xf8   :  { %v307_v42 = vrot.slane %v190_v25, %v1228_v58  ;;  %v699_v30 = vsub.s32 3, %v1182_v6 }
  0xf9   :  { %v155_v19 = vpop.xlane.xlu1 %154  ;;  %v410_v59 = vrot.slane %v211_v41, %v1203_v20  ;;  %v302_v20 = vsel %vm301_vm7, %v300_v34, %v295_v44 }
  0xfa   :  { %v134_v22 = vpop.xlane.xlu0 %133  ;;  %v205_v4 = vmul.f32 0.020408163, %v155_v19 }
  0xfb   :  { %v198_v26 = vmul.f32 0.020408163, %v134_v22  ;;  %v411_v36 = vsel %vm287_vm5, %v410_v59, %v406_v28 }
  0xfc   :  { %v381_v7 = vrot.slane %v205_v4, %v1219_v62  ;;  %v309_v4 = vsel %vm308_vm8, %v307_v42, %v302_v20 }
  0xfd   :  { %v158_v49 = vpop.xlane.xlu1 %157  ;;  %v347_v31 = vrot.slane %v198_v26, %v1228_v58 }
  0xfe   :  { %v176_v60 = vpop.xlane.xlu0 %175  ;;  %v206_v50 = vmul.f32 0.020408163, %v158_v49  ;;  %v382_v18 = vsel %vm301_vm7, %v381_v7, %v377_v46 }
  0xff   :  { %v212_v55 = vmul.f32 0.020408163, %v176_v60  ;;  %v348_v23 = vsel %vm308_vm8, %v347_v31, %v343_v47  ;;  %v664_v31 = vsub.s32 2, %v1182_v6 }
 0x100   :  { %v386_v35 = vrot.slane %v206_v50, %v1228_v58  ;;  %v428_v11 = vsel %vm427_vm9, %v348_v23, %v309_v4  ;;  %v594_v50 = vsub.s32 0, %v1182_v6 }
 0x101   :  { %v415_v33 = vrot.slane %v212_v55, %v1216_v51  ;;  %v182_v10 = vpop.xlane.xlu1 %181 }
 0x102   :  { %v179_v52 = vpop.xlane.xlu0 %178  ;;  %v214_v22 = vmul.f32 0.020408163, %v182_v10  ;;  %v387_v51 = vsel %vm308_vm8, %v386_v35, %v382_v18 }
 0x103   :  { %v213_v19 = vmul.f32 0.020408163, %v179_v52  ;;  %v416_v26 = vsel %vm294_vm6, %v415_v33, %v411_v36  ;;  %v430_v41 = vsel %vm429_vm10, %v387_v51, %v428_v11 }
 0x104   :  { %v425_v3 = vrot.slane %v214_v22, %v1228_v58 }
 0x105   :  { %v420_v63 = vrot.slane %v213_v19, %v1219_v62 }
 0x107   :  { %v421_v27 = vsel %vm301_vm7, %v420_v63, %v416_v26 }
 0x108   :  { %v426_v14 = vsel %vm308_vm8, %v425_v3, %v421_v27 }
 0x109   :  { %v432_v57 = vsel %vm431_vm11, %v426_v14, %v430_v41  ;;  %v1394_v14 = vld [vmem:[#allocation16_spill] sm:$0xff] }
 0x10a   :  { %846 = vmatmul.mubr.msk.f32.vlgmr.msra.gmra.mrb[0].mxu0 %vm433_vm12, %v432_v57 }
 0x1dd   :  { %v502_v62 = vpop.f32.mrb[0].mxu0 }
 0x1de   :  { %v506_v58 = vmax.f32 %v502_v62, 0.0  ;;  %v847_v43 = vpop.f32.mrb[1].mxu0  ;;  %v1396_v62 = vld [vmem:[#allocation20_spill] sm:$0xff] }
 0x1e0   :  { %851 = vmatmul.mubr.msk.f32.vlgmr.msra.gmra.mrb[0].mxu1 %vm508_vm14, %v506_v58 }
 0x2b3   :  { %v582_v25 = vpop.f32.mrb[0].mxu1 }
 0x2b4   :  { %v817_v49 = vmul.f32 -1.442695, %v582_v25  ;;  %v852_v60 = vpop.f32.mrb[1].mxu1  ;;  %v1397_v25 = vld [vmem:[#allocation18_spill] sm:$0xff] }
 0x2b6   :  { %874 = vpow2.f32 %v817_v49  ;;  %v1398_v49 = vld [vmem:[#allocation12_spill] sm:$0xff] }
 0x2c0   :  { %v875_v54 = vpop.eup %874 }
 0x2c1   :  { %v589_v56 = vadd.f32 1.0, %v875_v54 }
 0x2c3   :  { %876 = vrcp.f32 %v589_v56 }
 0x2cd   :  { %v877_v55 = vpop.eup %876 }
 0x2ce   :  { %v595_v34 = vrot.slane %v877_v55, %v594_v50  ;;  %v630_v7 = vrot.slane %v877_v55, %v629_v61  ;;  %v665_v44 = vrot.slane %v877_v55, %v664_v31  ;;  %v700_v59 = vrot.slane %v877_v55, %v699_v30  ;;  %v1399_v50 = vld [vmem:[#allocation21_spill] sm:$0xff] }
 0x2d0   :  { %601 = vbcast.lane.b32.xlu1 %v595_v34, 264  ;;  %597 = vbcast.lane.b32.xlu0 %v595_v34, 256 }
 0x2d4   :  { %605 = vbcast.lane.b32.xlu1 %v595_v34, 272  ;;  %613 = vbcast.lane.b32.xlu0 %v595_v34, 288 }
 0x2d8   :  { %609 = vbcast.lane.b32.xlu1 %v595_v34, 280  ;;  %621 = vbcast.lane.b32.xlu0 %v595_v34, 304 }
 0x2dc   :  { %617 = vbcast.lane.b32.xlu1 %v595_v34, 296  ;;  %632 = vbcast.lane.b32.xlu0 %v630_v7, 256 }
 0x2e0   :  { %625 = vbcast.lane.b32.xlu1 %v595_v34, 312  ;;  %640 = vbcast.lane.b32.xlu0 %v630_v7, 272  ;;  %v1400_v34 = vld [vmem:[#allocation15_spill] sm:$0xff] }
 0x2e4   :  { %636 = vbcast.lane.b32.xlu1 %v630_v7, 264  ;;  %648 = vbcast.lane.b32.xlu0 %v630_v7, 288 }
 0x2e8   :  { %644 = vbcast.lane.b32.xlu1 %v630_v7, 280  ;;  %656 = vbcast.lane.b32.xlu0 %v630_v7, 304 }
 0x2ec   :  { %652 = vbcast.lane.b32.xlu1 %v630_v7, 296  ;;  %667 = vbcast.lane.b32.xlu0 %v665_v44, 256 }
 0x2f0   :  { %660 = vbcast.lane.b32.xlu1 %v630_v7, 312  ;;  %675 = vbcast.lane.b32.xlu0 %v665_v44, 272 }
 0x2f4   :  { %671 = vbcast.lane.b32.xlu1 %v665_v44, 264  ;;  %683 = vbcast.lane.b32.xlu0 %v665_v44, 288 }
 0x2f8   :  { %679 = vbcast.lane.b32.xlu1 %v665_v44, 280  ;;  %691 = vbcast.lane.b32.xlu0 %v665_v44, 304 }
 0x2fc   :  { %687 = vbcast.lane.b32.xlu1 %v665_v44, 296  ;;  %702 = vbcast.lane.b32.xlu0 %v700_v59, 256 }
 0x300   :  { %695 = vbcast.lane.b32.xlu1 %v665_v44, 312  ;;  %710 = vbcast.lane.b32.xlu0 %v700_v59, 272  ;;  %v1401_v44 = vld [vmem:[#allocation13_spill] sm:$0xff] }
 0x304   :  { %706 = vbcast.lane.b32.xlu1 %v700_v59, 264  ;;  %718 = vbcast.lane.b32.xlu0 %v700_v59, 288 }
 0x308   :  { %714 = vbcast.lane.b32.xlu1 %v700_v59, 280  ;;  %726 = vbcast.lane.b32.xlu0 %v700_v59, 304 }
 0x30c   :  { %722 = vbcast.lane.b32.xlu1 %v700_v59, 296 }
 0x310   :  { %730 = vbcast.lane.b32.xlu1 %v700_v59, 312  ;;  %v1402_v59 = vld [vmem:[#allocation19_spill] sm:$0xff] }
 0x342   :  { %v602_v35 = vpop.permute.xlu1 %601  ;;  %v598_v38 = vpop.permute.xlu0 %597 }
 0x343   :  { %v733_v39 = vmul.f32 %v602_v35, %v1060_v5  ;;  %v732_v42 = vmul.f32 %v598_v38, %v1052_v1 }
 0x345   :  { %765 = vst.msk [vmem:[#allocation8 + $0x8] sm:$0xff] %vm86_vm0, %v733_v39  ;;  %764 = vst.msk [vmem:[#allocation8] sm:$0xff] %vm86_vm0, %v732_v42  ;;  %v1403_v42 = vld [vmem:[#allocation17_spill] sm:$0xff] }
 0x346   :  { %v606_v6 = vpop.permute.xlu1 %605  ;;  %v614_v33 = vpop.permute.xlu0 %613 }
 0x347   :  { %v734_v52 = vmul.f32 %v606_v6, %v1068_v9  ;;  %v736_v10 = vmul.f32 %v614_v33, %v1098_v24  ;;  %v1404_v33 = vld [vmem:[#allocation23_spill] sm:$0xff] }
 0x349   :  { %766 = vst.msk [vmem:[#allocation8 + $0x10] sm:$0xff] %vm86_vm0, %v734_v52  ;;  %768 = vst.msk [vmem:[#allocation8 + $0x20] sm:$0xff] %vm86_vm0, %v736_v10 }
 0x34a   :  { %v610_v46 = vpop.permute.xlu1 %609  ;;  %v622_v47 = vpop.permute.xlu0 %621 }
 0x34b   :  { %v735_v5 = vmul.f32 %v610_v46, %v1084_v17  ;;  %v738_v1 = vmul.f32 %v622_v47, %v1130_v40  ;;  %v1405_v46 = vld [vmem:[#allocation22_spill] sm:$0xff] }
 0x34d   :  { %767 = vst.msk [vmem:[#allocation8 + $0x18] sm:$0xff] %vm86_vm0, %v735_v5  ;;  %770 = vst.msk [vmem:[#allocation8 + $0x30] sm:$0xff] %vm86_vm0, %v738_v1  ;;  %v1406_v1 = vld [vmem:[#allocation24_spill] sm:$0xff] }
 0x34e   :  { %v618_v19 = vpop.permute.xlu1 %617  ;;  %v633_v22 = vpop.permute.xlu0 %632 }
 0x34f   :  { %v737_v9 = vmul.f32 %v618_v19, %v1114_v32  ;;  %v740_v24 = vmul.f32 %v633_v22, %v1050_v0 }
 0x351   :  { %769 = vst.msk [vmem:[#allocation8 + $0x28] sm:$0xff] %vm86_vm0, %v737_v9  ;;  %772 = vst.msk [vmem:[#allocation8 + $0x40] sm:$0xff] %vm86_vm0, %v740_v24 }
 0x352   :  { %v626_v20 = vpop.permute.xlu1 %625  ;;  %v641_v28 = vpop.permute.xlu0 %640 }
 0x353   :  { %v739_v17 = vmul.f32 %v626_v20, %v1146_v48  ;;  %v742_v40 = vmul.f32 %v641_v28, %v1066_v8 }
 0x355   :  { %771 = vst.msk [vmem:[#allocation8 + $0x38] sm:$0xff] %vm86_vm0, %v739_v17  ;;  %774 = vst.msk [vmem:[#allocation8 + $0x50] sm:$0xff] %vm86_vm0, %v742_v40 }
 0x356   :  { %v637_v18 = vpop.permute.xlu1 %636  ;;  %v649_v23 = vpop.permute.xlu0 %648 }
 0x357   :  { %v741_v32 = vmul.f32 %v637_v18, %v1054_v2  ;;  %v744_v0 = vmul.f32 %v649_v23, %v1108_v29 }
 0x359   :  { %773 = vst.msk [vmem:[#allocation8 + $0x48] sm:$0xff] %vm86_vm0, %v741_v32  ;;  %776 = vst.msk [vmem:[#allocation8 + $0x60] sm:$0xff] %vm86_vm0, %v744_v0 }
 0x35a   :  { %v645_v36 = vpop.permute.xlu1 %644  ;;  %v657_v51 = vpop.permute.xlu0 %656 }
 0x35b   :  { %v743_v48 = vmul.f32 %v645_v36, %v1082_v16  ;;  %v746_v8 = vmul.f32 %v657_v51, %v1140_v45 }
 0x35d   :  { %775 = vst.msk [vmem:[#allocation8 + $0x58] sm:$0xff] %vm86_vm0, %v743_v48  ;;  %778 = vst.msk [vmem:[#allocation8 + $0x70] sm:$0xff] %vm86_vm0, %v746_v8 }
 0x35e   :  { %v653_v63 = vpop.permute.xlu1 %652  ;;  %v668_v3 = vpop.permute.xlu0 %667 }
 0x35f   :  { %v745_v2 = vmul.f32 %v653_v63, %v1124_v37  ;;  %v748_v29 = vmul.f32 %v668_v3, %v1076_v13 }
 0x361   :  { %777 = vst.msk [vmem:[#allocation8 + $0x68] sm:$0xff] %vm86_vm0, %v745_v2  ;;  %780 = vst.msk [vmem:[#allocation8 + $0x80] sm:$0xff] %vm86_vm0, %v748_v29 }
 0x362   :  { %v661_v4 = vpop.permute.xlu1 %660  ;;  %v676_v26 = vpop.permute.xlu0 %675 }
 0x363   :  { %v747_v16 = vmul.f32 %v661_v4, %v1156_v53  ;;  %v750_v45 = vmul.f32 %v676_v26, %v1092_v21 }
 0x365   :  { %779 = vst.msk [vmem:[#allocation8 + $0x78] sm:$0xff] %vm86_vm0, %v747_v16  ;;  %782 = vst.msk [vmem:[#allocation8 + $0x90] sm:$0xff] %vm86_vm0, %v750_v45 }
 0x366   :  { %v672_v27 = vpop.permute.xlu1 %671  ;;  %v684_v11 = vpop.permute.xlu0 %683 }
 0x367   :  { %v749_v37 = vmul.f32 %v672_v27, %v1074_v12  ;;  %v752_v13 = vmul.f32 %v684_v11, %v1394_v14 }
 0x369   :  { %781 = vst.msk [vmem:[#allocation8 + $0x88] sm:$0xff] %vm86_vm0, %v749_v37  ;;  %784 = vst.msk [vmem:[#allocation8 + $0xa0] sm:$0xff] %vm86_vm0, %v752_v13 }
 0x36a   :  { %v680_v41 = vpop.permute.xlu1 %679  ;;  %v692_v57 = vpop.permute.xlu0 %691 }
 0x36b   :  { %v751_v53 = vmul.f32 %v680_v41, %v1395_v15  ;;  %v754_v21 = vmul.f32 %v692_v57, %v1396_v62 }
 0x36d   :  { %783 = vst.msk [vmem:[#allocation8 + $0x98] sm:$0xff] %vm86_vm0, %v751_v53  ;;  %786 = vst.msk [vmem:[#allocation8 + $0xb0] sm:$0xff] %vm86_vm0, %v754_v21 }
 0x36e   :  { %v688_v58 = vpop.permute.xlu1 %687  ;;  %v703_v43 = vpop.permute.xlu0 %702 }
 0x36f   :  { %v753_v12 = vmul.f32 %v688_v58, %v1397_v25  ;;  %v756_v60 = vmul.f32 %v703_v43, %v1398_v49 }
 0x371   :  { %785 = vst.msk [vmem:[#allocation8 + $0xa8] sm:$0xff] %vm86_vm0, %v753_v12  ;;  %788 = vst.msk [vmem:[#allocation8 + $0xc0] sm:$0xff] %vm86_vm0, %v756_v60 }
 0x372   :  { %v696_v54 = vpop.permute.xlu1 %695  ;;  %v711_v56 = vpop.permute.xlu0 %710 }
 0x373   :  { %v755_v55 = vmul.f32 %v696_v54, %v1399_v50  ;;  %v758_v61 = vmul.f32 %v711_v56, %v1400_v34 }
 0x375   :  { %787 = vst.msk [vmem:[#allocation8 + $0xb8] sm:$0xff] %vm86_vm0, %v755_v55  ;;  %790 = vst.msk [vmem:[#allocation8 + $0xd0] sm:$0xff] %vm86_vm0, %v758_v61 }
 0x376   :  { %v707_v7 = vpop.permute.xlu1 %706  ;;  %v719_v31 = vpop.permute.xlu0 %718 }
 0x377   :  { %v757_v30 = vmul.f32 %v707_v7, %v1401_v44  ;;  %v760_v35 = vmul.f32 %v719_v31, %v1402_v59 }
 0x379   :  { %789 = vst.msk [vmem:[#allocation8 + $0xc8] sm:$0xff] %vm86_vm0, %v757_v30  ;;  %792 = vst.msk [vmem:[#allocation8 + $0xe0] sm:$0xff] %vm86_vm0, %v760_v35 }
 0x37a   :  { %v715_v38 = vpop.permute.xlu1 %714  ;;  %v727_v39 = vpop.permute.xlu0 %726 }
 0x37b   :  { %v759_v6 = vmul.f32 %v715_v38, %v1403_v42  ;;  %v762_v52 = vmul.f32 %v727_v39, %v1404_v33 }
 0x37d   :  { %791 = vst.msk [vmem:[#allocation8 + $0xd8] sm:$0xff] %vm86_vm0, %v759_v6  ;;  %794 = vst.msk [vmem:[#allocation8 + $0xf0] sm:$0xff] %vm86_vm0, %v762_v52 }
 0x37e   :  { %v723_v10 = vpop.permute.xlu1 %722 }
 0x37f   :  { %v761_v47 = vmul.f32 %v723_v10, %v1405_v46 }
 0x381   :  { %793 = vst.msk [vmem:[#allocation8 + $0xe8] sm:$0xff] %vm86_vm0, %v761_v47 }
 0x382   :  { %v731_v5 = vpop.permute.xlu1 %730 }
 0x383   :  { %v763_v19 = vmul.f32 %v731_v5, %v1406_v1 }
 0x385   :  { %795 = vst.msk [vmem:[#allocation8 + $0xf8] sm:$0xff] %vm86_vm0, %v763_v19 }
 0x386   :  { %955 = shalt.err (!%p952_p0)
}
 0x387   :  { %s956_s27 = scalar_lea.hbm %s1367_s3, 4096 }
 0x388   :  { %p957_p1 = scmp.ne.s32.totalorder %s1367_s3, %s956_s27  ;;  %p960_p2 = scmp.lt.u32.totalorder %s956_s27, %s1367_s3 }
 0x38a   :  { %p962_p3 = pnand %p960_p2, %p957_p1 }
 0x38c   :  { %965 = shalt.err (!%p962_p3)
}
 0x38d   :  { %807 = dma.vmem_to_hbm [thread:$0]  %s802_s21, 4096, %s1367_s3, [#allocation4], %s974_s24, %s974_s24, %s975_s25  }
 0x38e   :  { %970 = dma.done.wait [#allocation4], 4096  }
 0x38f   :  { %971 = vsyncadd [#allocation4], 4294963200 }
 0x390   :  { %811 = vsyncpa [#allocation3], 1 }
 0x391   :  { %812 = vsyncpa [#allocation6], 1 }
 0x392   :  { %813 = vsyncpa [#allocation4], 1 }

</bundles_post_ra>
